<compile_context>
chip_gen: v7x
topology: tpu7x:2x2x1
jax: 0.10.0
libtpu: 0.0.40
codegen_flags: <defaults>
</compile_context>

<pallas_src>
import jax
import jax.numpy as jnp
from jax.experimental import pallas as pl
from jax.experimental.pallas import tpu as pltpu


_LANE_TILE = 512  # multiple of 128 lanes; fills the 256-wide MXU on v6e/v7x


def _round_up(n, m):
    return ((n + m - 1) // m) * m


def _cdiv(a, b):
    return -(-a // b)


def _choose_tiling(B, tb):
    """Pick a lane-dense batch tile (multiple of _LANE_TILE) and padded batch."""
    Bp = _round_up(B, _LANE_TILE)
    TB = min(_round_up(tb, _LANE_TILE), Bp)
    n = _cdiv(Bp, TB)
    if n == 1 and Bp >= 2 * _LANE_TILE:
        # v7x has 2 TensorCores: prefer >= 2 tiles so the "parallel" batch axis
        # can be sharded across both.  Harmless on v5e/v6e (single TC).
        TB = _round_up(_cdiv(Bp, 2), _LANE_TILE)
        n = _cdiv(Bp, TB)
    return TB, n * TB, n


def _mlp_kernel(xT_ref, w1t_ref, b1_ref, w2t_ref, b2_ref, w3c_ref, b3_ref, o_ref):
    # Transposed layout: batch on the lane axis, feature dims on sublanes.
    xT = xT_ref[...]                                                     # (F,  TB)
    # Layer 1 + ReLU: tiny stationary weight LHS, lane-dense activation RHS.
    h1 = jnp.dot(w1t_ref[...], xT, preferred_element_type=jnp.float32)  # (H1, TB)
    h1 = jnp.maximum(h1 + b1_ref[...], 0.0)
    # Layer 2 + ReLU.
    h2 = jnp.dot(w2t_ref[...], h1, preferred_element_type=jnp.float32)  # (H2, TB)
    h2 = jnp.maximum(h2 + b2_ref[...], 0.0)
    # Output layer (N == 1): broadcast-multiply + sublane reduce -> (1, TB)
    # lane-dense row; keeps the MXU free and the store unmasked/dense.
    out = jnp.sum(h2 * w3c_ref[...], axis=0, keepdims=True) + b3_ref[...]
    o_ref[...] = out.astype(o_ref.dtype)


def housing_model_forward(x, params, *, tb=8192):
    """x: [B, input_size] f32; params: dict of (w1,b1,w2,b2,w3,b3).

    Returns [B, 1] f32 (same semantics as the PyTorch Housing_Model forward).
    """
    w1, b1, w2, b2, w3, b3 = (params[k] for k in ("w1", "b1", "w2", "b2", "w3", "b3"))
    B, F = x.shape
    H1 = w1.shape[1]
    H2 = w2.shape[1]

    TB, Bp, n_tiles = _choose_tiling(B, tb)

    # Transposed operands: weights become the MXU LHS; biases become columns
    # that broadcast along the lane (batch) axis.
    w1t = w1.T                    # (H1, F)
    w2t = w2.T                    # (H2, H1)
    w3c = w3.reshape(H2, 1)       # (H2, 1) column for the sublane reduce
    b1c = b1.reshape(H1, 1)
    b2c = b2.reshape(H2, 1)
    b3c = b3.reshape(1, 1)

    # One wrapper-side transpose so batch lies on the lane axis; pad the lane
    # dim to a whole number of tiles (padded columns are sliced off after).
    xT = jnp.pad(x.T, ((0, 0), (0, Bp - B)))      # (F, Bp)

    def resident(a):
        # Same block every grid step -> DMA'd once, stays VMEM-resident.
        return pl.BlockSpec(a.shape, lambda i: (0, 0))

    flops = 2 * Bp * (F * H1 + H1 * H2 + H2)
    weight_bytes = 4 * (F * H1 + H1 + H1 * H2 + H2 + H2 + 1)
    cost = pl.CostEstimate(
        flops=flops,
        transcendentals=0,
        bytes_accessed=4 * Bp * (F + 1) + weight_bytes,
    )

    out = pl.pallas_call(
        _mlp_kernel,
        out_shape=jax.ShapeDtypeStruct((1, Bp), jnp.float32),
        grid=(n_tiles,),
        in_specs=[
            pl.BlockSpec((F, TB), lambda i: (0, i)),   # streamed activation tile
            resident(w1t), resident(b1c),
            resident(w2t), resident(b2c),
            resident(w3c), resident(b3c),
        ],
        out_specs=pl.BlockSpec((1, TB), lambda i: (0, i)),  # lane-dense output row
        compiler_params=pltpu.CompilerParams(
            dimension_semantics=("parallel",),
        ),
        cost_estimate=cost,
    )(xT, w1t, b1c, w2t, b2c, w3c, b3c)

    return out[0, :B].reshape(B, 1)


def init_params(input_size, hidden_size1, hidden_size2, key):
    """Deterministic synthetic init mirroring nn.Linear shapes (stored transposed)."""
    ks = jax.random.split(key, 6)
    s1 = 1.0 / jnp.sqrt(input_size)
    s2 = 1.0 / jnp.sqrt(hidden_size1)
    s3 = 1.0 / jnp.sqrt(hidden_size2)
    return {
        "w1": jax.random.uniform(ks[0], (input_size, hidden_size1), jnp.float32, -s1, s1),
        "b1": jax.random.uniform(ks[1], (1, hidden_size1), jnp.float32, -s1, s1),
        "w2": jax.random.uniform(ks[2], (hidden_size1, hidden_size2), jnp.float32, -s2, s2),
        "b2": jax.random.uniform(ks[3], (1, hidden_size2), jnp.float32, -s2, s2),
        "w3": jax.random.uniform(ks[4], (hidden_size2, 1), jnp.float32, -s3, s3),
        "b3": jax.random.uniform(ks[5], (1, 1), jnp.float32, -s3, s3),
    }


def reference_forward(x, p):
    h1 = jnp.maximum(x @ p["w1"] + p["b1"], 0.0)
    h2 = jnp.maximum(h1 @ p["w2"] + p["b2"], 0.0)
    return h2 @ p["w3"] + p["b3"]


if __name__ == "__main__":
    key = jax.random.PRNGKey(0)
    k_x, k_p, k_big = jax.random.split(key, 3)

    input_size, hidden_size1, hidden_size2 = 8, 32, 16
    params = init_params(input_size, hidden_size1, hidden_size2, k_p)

    # Small case: single 512-lane tile, grid=(1,).
    batch = 8
    x = jax.random.normal(k_x, (batch, input_size), dtype=jnp.float32)
    out = jax.block_until_ready(housing_model_forward(x, params))
    ref = reference_forward(x, params)
    assert out.shape == (batch, 1)
    assert jnp.allclose(out, ref, atol=1e-5, rtol=1e-5)

    # Larger, ragged batch: 1000 -> padded to 1024, split into 2 tiles of 512
    # (exercises the batch grid, VMEM-resident weights, lane-dense output row,
    # the v7x two-tile split, and the pad-then-slice path).
    big_batch = 1000
    xb = jax.random.normal(k_big, (big_batch, input_size), dtype=jnp.float32)
    out_b = jax.block_until_ready(housing_model_forward(xb, params, tb=8192))
    ref_b = reference_forward(xb, params)
    assert out_b.shape == (big_batch, 1)
    assert jnp.allclose(out_b, ref_b, atol=1e-4, rtol=1e-4)

    print("KERNEL_OK")
</pallas_src>

<mosaic_0001>
module attributes {stable_mosaic.version = 11 : i64} {
  func.func @_mlp_kernel(%arg0: i32, %arg1: memref<8x512xf32, #tpu.memory_space<vmem>>, %arg2: memref<32x8xf32, #tpu.memory_space<vmem>>, %arg3: memref<32x1xf32, #tpu.memory_space<vmem>>, %arg4: memref<16x32xf32, #tpu.memory_space<vmem>>, %arg5: memref<16x1xf32, #tpu.memory_space<vmem>>, %arg6: memref<16x1xf32, #tpu.memory_space<vmem>>, %arg7: memref<1x1xf32, #tpu.memory_space<vmem>>, %arg8: memref<1x512xf32, #tpu.memory_space<vmem>>) attributes {dimension_semantics = [#tpu.dimension_semantics<parallel>], iteration_bounds = array<i64: 1>, scalar_prefetch = 0 : i64, scratch_operands = 0 : i64, tpu.core_type = #tpu.core_type<tc>, window_params = [{transform_indices = @transform_0, window_bounds = array<i64: 8, 512>}, {pipeline_mode = #tpu.pipeline_mode<synchronous>, transform_indices = @transform_1, window_bounds = array<i64: 32, 8>}, {pipeline_mode = #tpu.pipeline_mode<synchronous>, transform_indices = @transform_2, window_bounds = array<i64: 32, 1>}, {pipeline_mode = #tpu.pipeline_mode<synchronous>, transform_indices = @transform_3, window_bounds = array<i64: 16, 32>}, {pipeline_mode = #tpu.pipeline_mode<synchronous>, transform_indices = @transform_4, window_bounds = array<i64: 16, 1>}, {pipeline_mode = #tpu.pipeline_mode<synchronous>, transform_indices = @transform_5, window_bounds = array<i64: 16, 1>}, {pipeline_mode = #tpu.pipeline_mode<synchronous>, transform_indices = @transform_6, window_bounds = array<i64: 1, 1>}, {transform_indices = @transform_7, window_bounds = array<i64: 1, 512>}]} {
    %c0 = arith.constant 0 : index
    %c0_0 = arith.constant 0 : index
    %0 = vector.load %arg1[%c0, %c0_0] : memref<8x512xf32, #tpu.memory_space<vmem>>, vector<8x512xf32>
    %c0_1 = arith.constant 0 : index
    %c0_2 = arith.constant 0 : index
    %1 = vector.load %arg2[%c0_1, %c0_2] : memref<32x8xf32, #tpu.memory_space<vmem>>, vector<32x8xf32>
    %cst = arith.constant dense<0.000000e+00> : vector<32x512xf32>
    %2 = tpu.matmul %1, %0, %cst {dimension_numbers = #tpu.dot_dimension_numbers<[1], [0], [0], [1], [0, 0, 1, 1], [], []>} : vector<32x8xf32>, vector<8x512xf32>, vector<32x512xf32> -> vector<32x512xf32>
    %c0_3 = arith.constant 0 : index
    %c0_4 = arith.constant 0 : index
    %3 = vector.load %arg3[%c0_3, %c0_4] : memref<32x1xf32, #tpu.memory_space<vmem>>, vector<32x1xf32>
    %4 = vector.broadcast %3 : vector<32x1xf32> to vector<32x512xf32>
    %5 = arith.addf %2, %4 : vector<32x512xf32>
    %cst_5 = arith.constant 0.000000e+00 : f32
    %6 = vector.broadcast %cst_5 : f32 to vector<32x512xf32>
    %7 = arith.maximumf %5, %6 : vector<32x512xf32>
    %c0_6 = arith.constant 0 : index
    %c0_7 = arith.constant 0 : index
    %8 = vector.load %arg4[%c0_6, %c0_7] : memref<16x32xf32, #tpu.memory_space<vmem>>, vector<16x32xf32>
    %cst_8 = arith.constant dense<0.000000e+00> : vector<16x512xf32>
    %9 = tpu.matmul %8, %7, %cst_8 {dimension_numbers = #tpu.dot_dimension_numbers<[1], [0], [0], [1], [0, 0, 1, 1], [], []>} : vector<16x32xf32>, vector<32x512xf32>, vector<16x512xf32> -> vector<16x512xf32>
    %c0_9 = arith.constant 0 : index
    %c0_10 = arith.constant 0 : index
    %10 = vector.load %arg5[%c0_9, %c0_10] : memref<16x1xf32, #tpu.memory_space<vmem>>, vector<16x1xf32>
    %11 = vector.broadcast %10 : vector<16x1xf32> to vector<16x512xf32>
    %12 = arith.addf %9, %11 : vector<16x512xf32>
    %cst_11 = arith.constant 0.000000e+00 : f32
    %13 = vector.broadcast %cst_11 : f32 to vector<16x512xf32>
    %14 = arith.maximumf %12, %13 : vector<16x512xf32>
    %c0_12 = arith.constant 0 : index
    %c0_13 = arith.constant 0 : index
    %15 = vector.load %arg6[%c0_12, %c0_13] : memref<16x1xf32, #tpu.memory_space<vmem>>, vector<16x1xf32>
    %16 = vector.broadcast %15 : vector<16x1xf32> to vector<16x512xf32>
    %17 = arith.mulf %14, %16 : vector<16x512xf32>
    %cst_14 = arith.constant dense<0.000000e+00> : vector<512xf32>
    %18 = vector.multi_reduction <add>, %17, %cst_14 [0] : vector<16x512xf32> to vector<512xf32>
    %19 = vector.shape_cast %18 : vector<512xf32> to vector<1x512xf32>
    %c0_15 = arith.constant 0 : index
    %c0_16 = arith.constant 0 : index
    %20 = vector.load %arg7[%c0_15, %c0_16] : memref<1x1xf32, #tpu.memory_space<vmem>>, vector<1x1xf32>
    %21 = vector.broadcast %20 : vector<1x1xf32> to vector<1x512xf32>
    %22 = arith.addf %19, %21 : vector<1x512xf32>
    %c0_17 = arith.constant 0 : index
    %c0_18 = arith.constant 0 : index
    %23 = vector.load %arg8[%c0_17, %c0_18] : memref<1x512xf32, #tpu.memory_space<vmem>>, vector<1x512xf32>
    tpu.vector_store %arg8[%c0_17, %c0_18], %22 {strides = array<i32>} : memref<1x512xf32, #tpu.memory_space<vmem>>, vector<1x512xf32>,
    return
  }
  func.func @transform_0(%arg0: i32) -> (i32, i32) {
    %c0_i32 = arith.constant 0 : i32
    %c0_i32_0 = arith.constant 0 : i32
    return %c0_i32, %arg0 : i32, i32
  }
  func.func @transform_1(%arg0: i32) -> (i32, i32) {
    %c0_i32 = arith.constant 0 : i32
    %c0_i32_0 = arith.constant 0 : i32
    %c0_i32_1 = arith.constant 0 : i32
    return %c0_i32, %c0_i32_0 : i32, i32
  }
  func.func @transform_2(%arg0: i32) -> (i32, i32) {
    %c0_i32 = arith.constant 0 : i32
    %c0_i32_0 = arith.constant 0 : i32
    %c0_i32_1 = arith.constant 0 : i32
    return %c0_i32, %c0_i32_0 : i32, i32
  }
  func.func @transform_3(%arg0: i32) -> (i32, i32) {
    %c0_i32 = arith.constant 0 : i32
    %c0_i32_0 = arith.constant 0 : i32
    %c0_i32_1 = arith.constant 0 : i32
    return %c0_i32, %c0_i32_0 : i32, i32
  }
  func.func @transform_4(%arg0: i32) -> (i32, i32) {
    %c0_i32 = arith.constant 0 : i32
    %c0_i32_0 = arith.constant 0 : i32
    %c0_i32_1 = arith.constant 0 : i32
    return %c0_i32, %c0_i32_0 : i32, i32
  }
  func.func @transform_5(%arg0: i32) -> (i32, i32) {
    %c0_i32 = arith.constant 0 : i32
    %c0_i32_0 = arith.constant 0 : i32
    %c0_i32_1 = arith.constant 0 : i32
    return %c0_i32, %c0_i32_0 : i32, i32
  }
  func.func @transform_6(%arg0: i32) -> (i32, i32) {
    %c0_i32 = arith.constant 0 : i32
    %c0_i32_0 = arith.constant 0 : i32
    %c0_i32_1 = arith.constant 0 : i32
    return %c0_i32, %c0_i32_0 : i32, i32
  }
  func.func @transform_7(%arg0: i32) -> (i32, i32) {
    %c0_i32 = arith.constant 0 : i32
    %c0_i32_0 = arith.constant 0 : i32
    return %c0_i32, %arg0 : i32, i32
  }
}

</mosaic_0001>

<bundles_post_ra>
// kernel: tpu_custom_call.1
= control target key start
LH: loop header
LB: loop body
LE: loop exit
PB: predicated region body
PF: predicated region fallthrough
CT: control target
= control target key end

     0   :  { %s752_s0 = inlined_call_operand.vmem [shape: f32[8,512], index: 0, kind: input, shape index: {}]   ;;  %s753_s1 = inlined_call_operand.vmem [shape: f32[32,8], index: 1, kind: input, shape index: {}]   ;;  %s754_s2 = inlined_call_operand.vmem [shape: f32[32,1], index: 2, kind: input, shape index: {}]   ;;  %s755_s3 = inlined_call_operand.vmem [shape: f32[16,32], index: 3, kind: input, shape index: {}]   ;;  %s756_s4 = inlined_call_operand.vmem [shape: f32[16,1], index: 4, kind: input, shape index: {}]   ;;  %s757_s5 = inlined_call_operand.vmem [shape: f32[16,1], index: 5, kind: input, shape index: {}]   ;;  %s758_s6 = inlined_call_operand.<no memory space> [shape: f32[1,1], index: 6, kind: input, shape index: {}]   ;;  %s759_s7 = inlined_call_operand.hbm [shape: f32[1,512], index: 7, kind: output, shape index: {}]  }
   0x1   :  { %v12_v0 = vstv %s758_s6 }
   0x2   :  { %13 = vst [vmem:[#allocation2] sm:$0x1] %v12_v0 }
   0x3   :  { %v30_v1 = vld [vmem:[%s752_s0 + $0x8] sm:$0xff]  ;;  %v32_v2 = vld [vmem:[%s752_s0 + $0x18] sm:$0xff]  ;;  %v29_v3 = vld [vmem:[%s752_s0] sm:$0xff]  ;;  %vm61_vm0 = vcmask 64512   ;;  %v619_v6 = vmov 0.0  }
   0x4   :  { %74 = vmatprep.subr.mxu0 %v30_v1  ;;  %163 = vmatprep.subr.mxu1 %v32_v2  ;;  %v31_v4 = vld [vmem:[%s752_s0 + $0x10] sm:$0xff]  ;;  %v33_v5 = vld [vmem:[%s753_s1] sm:$0xff]  ;;  %v34_v9 = vld [vmem:[%s753_s1 + $0x8] sm:$0xff] }
   0x5   :  { %75 = vmatpush1.msra.mxu0 %v29_v3  ;;  %138 = vmatprep.mubr.f32.mxu0 %v619_v6  ;;  %v37_v7 = vld [vmem:[%s754_s2] sm:$0xff]  ;;  %v39_v8 = vld [vmem:[%s754_s2 + $0x10] sm:$0xff] }
   0x6   :  { %164 = vmatpush1.msra.mxu1 %v31_v4  ;;  %227 = vmatprep.mubr.f32.mxu1 %v619_v6 }
   0x7   :  { %561 = vmatmul.mubr.msk.f32.vlgmr.msra.gmra.mrb[0].mxu0 %vm61_vm0, %v33_v5  ;;  %565 = vmatmul.mubr.msk.f32.vlgmr.msra.gmra.mrb[0].mxu1 %vm61_vm0, %v33_v5 }
   0x8   :  { %144 = vmatprep.mubr.f32.mxu0 %v619_v6  ;;  %233 = vmatprep.mubr.f32.mxu1 %v619_v6 }
   0x9   :  { %14 = vsyncpa [#allocation4], 0  ;;  %v620_v10 = vmov 0   ;;  %v38_v11 = vld [vmem:[%s754_s2 + $0x8] sm:$0xff]  ;;  %v40_v12 = vld [vmem:[%s754_s2 + $0x18] sm:$0xff]  ;;  %vm282_vm1 = vcmask 261120  }
   0xa   :  { %593 = vset.pattern.permute.xlu0 %v620_v10  ;;  %594 = vset.pattern.permute.xlu1 %v620_v10  ;;  %v35_v13 = vld [vmem:[%s753_s1 + $0x10] sm:$0xff]  ;;  %v270_v14 = vld [vmem:[%s756_s4] sm:$0xff]  ;;  %v271_v15 = vld [vmem:[%s756_s4 + $0x8] sm:$0xff] }
   0xb   :  { %43 = vperm.xlu0 %593, %v37_v7   ;;  %53 = vperm.xlu1 %594, %v39_v8   ;;  %v36_v16 = vld [vmem:[%s753_s1 + $0x18] sm:$0xff]  ;;  %v451_v17 = vld [vmem:[%s757_s5] sm:$0xff]  ;;  %v452_v18 = vld [vmem:[%s757_s5 + $0x8] sm:$0xff] }
   0xc   :  { %562 = vmatmul.mubr.msk.f32.gmra.mrb[2].mxu0 %vm61_vm0, %v34_v9  ;;  %566 = vmatmul.mubr.msk.f32.gmra.mrb[2].mxu1 %vm61_vm0, %v34_v9  ;;  %v499_v19 = vld [vmem:[#allocation2] sm:$0x1] }
   0xd   :  { %150 = vmatprep.mubr.f32.mxu0 %v619_v6  ;;  %239 = vmatprep.mubr.f32.mxu1 %v619_v6 }
   0xf   :  { %48 = vperm.xlu0 %593, %v38_v11   ;;  %58 = vperm.xlu1 %594, %v40_v12  }
  0x10   :  { %563 = vmatmul.mubr.msk.f32.gmra.mrb[4].mxu0 %vm61_vm0, %v35_v13  ;;  %567 = vmatmul.mubr.msk.f32.gmra.mrb[4].mxu1 %vm61_vm0, %v35_v13 }
  0x11   :  { %156 = vmatprep.mubr.f32.mxu0 %v619_v6  ;;  %245 = vmatprep.mubr.f32.mxu1 %v619_v6 }
  0x13   :  { %274 = vperm.xlu0 %593, %v270_v14   ;;  %279 = vperm.xlu1 %594, %v271_v15  }
  0x14   :  { %564 = vmatmul.mubr.msk.f32.gmra.mrb[6].mxu0 %vm61_vm0, %v36_v16  ;;  %568 = vmatmul.mubr.msk.f32.gmra.mrb[6].mxu1 %vm61_vm0, %v36_v16 }
  0x15   :  { %353 = vmatprep.mubr.f32.mxu0 %v619_v6  ;;  %430 = vmatprep.mubr.f32.mxu1 %v619_v6 }
  0x17   :  { %455 = vperm.xlu0 %593, %v451_v17   ;;  %460 = vperm.xlu1 %594, %v452_v18   ;;  %v268_v17 = vld [vmem:[%s755_s3] sm:$0xff]  ;;  %v269_v18 = vld [vmem:[%s755_s3 + $0x8] sm:$0xff]  ;;  %s622_s3 = smov [#allocation3]  }
  0x18   :  { %s553_s10 = sshll.u32 %s622_s3, 4  ;;  %s554_s10 = int_to_ptr.vmem [resolvable:$true] %s553_s10 }
  0x19   :  { %s595_s6 = scalar_lea.vmem %s554_s10, 64  ;;  %p600_p1 = scmp.lt.s32.totalorder %s554_s10, %s554_s10 }
  0x1a   :  { %p596_p0 = scmp.ne.s32.totalorder %s554_s10, %s595_s6  ;;  %p601_p2 = scmp.lt.s32.totalorder %s595_s6, %s595_s6 }
  0x1b   :  { %502 = vperm.xlu0 %593, %v499_v19  }
  0x1c   :  { %p602_p3 = por %p601_p2, %p600_p1 }
  0x1e   :  { %p603_p4 = pnand %p602_p3, %p596_p0 }
  0x8a   :  { %v44_v20 = vpop.permute.xlu0 %43  ;;  %v54_v26 = vpop.permute.xlu1 %53 }
  0x8e   :  { %v49_v25 = vpop.permute.xlu0 %48  ;;  %v59_v55 = vpop.permute.xlu1 %58 }
  0x92   :  { %v275_v19 = vpop.permute.xlu0 %274 }
  0xda   :  { %v140_v21 = vpop.f32.mrb[0].mxu0  ;;  %v229_v22 = vpop.f32.mrb[0].mxu1 }
  0xdb   :  { %v142_v23 = vpop.f32.mrb[1].mxu0  ;;  %v231_v24 = vpop.f32.mrb[1].mxu1  ;;  %v141_v27 = vadd.f32 %v140_v21, %v44_v20  ;;  %v230_v28 = vadd.f32 %v229_v22, %v44_v20 }
  0xdc   :  { %v143_v29 = vadd.f32 %v142_v23, %v44_v20  ;;  %v232_v30 = vadd.f32 %v231_v24, %v44_v20 }
  0xdd   :  { %v252_v39 = vmax.f32 %v141_v27, 0.0  ;;  %v254_v40 = vmax.f32 %v230_v28, 0.0 }
  0xde   :  { %v253_v43 = vmax.f32 %v143_v29, 0.0  ;;  %v255_v44 = vmax.f32 %v232_v30, 0.0 }
  0xdf   :  { %v146_v31 = vpop.f32.mrb[2].mxu0  ;;  %v235_v32 = vpop.f32.mrb[2].mxu1 }
  0xe0   :  { %v147_v33 = vadd.f32 %v146_v31, %v49_v25  ;;  %v236_v34 = vadd.f32 %v235_v32, %v49_v25  ;;  %v148_v35 = vpop.f32.mrb[3].mxu0  ;;  %v237_v36 = vpop.f32.mrb[3].mxu1 }
  0xe1   :  { %v149_v37 = vadd.f32 %v148_v35, %v49_v25  ;;  %v238_v38 = vadd.f32 %v237_v36, %v49_v25 }
  0xe2   :  { %v256_v41 = vmax.f32 %v147_v33, 0.0  ;;  %v258_v42 = vmax.f32 %v236_v34, 0.0 }
  0xe3   :  { %v257_v45 = vmax.f32 %v149_v37, 0.0  ;;  %v259_v46 = vmax.f32 %v238_v38, 0.0  ;;  %v152_v47 = vpop.f32.mrb[4].mxu0  ;;  %v241_v48 = vpop.f32.mrb[4].mxu1 }
  0xe4   :  { %v575_v49 = vpack.c.bf16 %v256_v41, %v252_v39  ;;  %v583_v50 = vpack.c.bf16 %v258_v42, %v254_v40  ;;  %v154_v51 = vpop.f32.mrb[5].mxu0  ;;  %v243_v52 = vpop.f32.mrb[5].mxu1  ;;  %v153_v56 = vadd.f32 %v152_v47, %v54_v26  ;;  %v242_v57 = vadd.f32 %v241_v48, %v54_v26 }
  0xe5   :  { %v573_v53 = vpack.c.bf16 %v257_v45, %v253_v43  ;;  %v581_v54 = vpack.c.bf16 %v259_v46, %v255_v44  ;;  %v155_v58 = vadd.f32 %v154_v51, %v54_v26  ;;  %v244_v59 = vadd.f32 %v243_v52, %v54_v26  ;;  %v280_v26 = vpop.permute.xlu1 %279  ;;  %v456_v42 = vpop.permute.xlu0 %455 }
  0xe6   :  { %v260_v4 = vmax.f32 %v153_v56, 0.0  ;;  %v262_v5 = vmax.f32 %v242_v57, 0.0 }
  0xe7   :  { %v158_v60 = vpop.f32.mrb[6].mxu0  ;;  %v247_v61 = vpop.f32.mrb[6].mxu1  ;;  %574 = vmatprep.subr.bf16.mxu0 %v573_v53  ;;  %582 = vmatprep.subr.bf16.mxu1 %v581_v54  ;;  %v261_v9 = vmax.f32 %v155_v58, 0.0  ;;  %v263_v10 = vmax.f32 %v244_v59, 0.0  ;;  %v505_v54 = vlaneseq }
  0xe8   :  { %v159_v62 = vadd.f32 %v158_v60, %v59_v55  ;;  %v248_v63 = vadd.f32 %v247_v61, %v59_v55  ;;  %v160_v0 = vpop.f32.mrb[7].mxu0  ;;  %v249_v1 = vpop.f32.mrb[7].mxu1  ;;  %576 = vmatpush1.bf16.msra.mxu0 %v575_v49  ;;  %584 = vmatpush1.bf16.msra.mxu1 %v583_v50 }
  0xe9   :  { %v161_v2 = vadd.f32 %v160_v0, %v59_v55  ;;  %v250_v3 = vadd.f32 %v249_v1, %v59_v55  ;;  %v461_v43 = vpop.permute.xlu1 %460  ;;  %vm544_vm2 = vcmp.lt.s32.totalorder %v505_v54, 512 }
  0xea   :  { %v264_v7 = vmax.f32 %v159_v62, 0.0  ;;  %v266_v8 = vmax.f32 %v248_v63, 0.0  ;;  %v506_v63 = vshrl.u32 %v505_v54, 7 }
  0xeb   :  { %v265_v11 = vmax.f32 %v161_v2, 0.0  ;;  %v267_v12 = vmax.f32 %v250_v3, 0.0 }
  0xec   :  { %v579_v13 = vpack.c.bf16 %v264_v7, %v260_v4  ;;  %v587_v14 = vpack.c.bf16 %v266_v8, %v262_v5  ;;  %v621_v7 = vmov 1966171168  }
  0xed   :  { %v577_v15 = vpack.c.bf16 %v265_v11, %v261_v9  ;;  %v585_v16 = vpack.c.bf16 %v267_v12, %v263_v10  ;;  %v520_v8 = vunpack.c.l.s4 %v621_v7  ;;  %v507_v11 = vsub.s32 0, %v506_v63 }
  0xef   :  { %578 = vmatprep.subr.bf16.mxu0 %v577_v15  ;;  %586 = vmatprep.subr.bf16.mxu1 %v585_v16 }
  0xf0   :  { %580 = vmatpush1.bf16.msra.mxu0 %v579_v13  ;;  %588 = vmatpush1.bf16.msra.mxu1 %v587_v14  ;;  %v503_v14 = vpop.permute.xlu0 %502 }
  0xf3   :  { %569 = vmatmul.mubr.msk.f32.vlgmr.msra.gmra.mrb[8].mxu0 %vm282_vm1, %v268_v17  ;;  %571 = vmatmul.mubr.msk.f32.vlgmr.msra.gmra.mrb[8].mxu1 %vm282_vm1, %v268_v17 }
  0xf4   :  { %359 = vmatprep.mubr.f32.mxu0 %v619_v6  ;;  %436 = vmatprep.mubr.f32.mxu1 %v619_v6 }
  0xf7   :  { %570 = vmatmul.mubr.msk.f32.gmra.mrb[10].mxu0 %vm282_vm1, %v269_v18  ;;  %572 = vmatmul.mubr.msk.f32.gmra.mrb[10].mxu1 %vm282_vm1, %v269_v18 }
 0x1c6   :  { %v355_v20 = vpop.f32.mrb[8].mxu0  ;;  %v432_v21 = vpop.f32.mrb[8].mxu1 }
 0x1c7   :  { %v356_v22 = vadd.f32 %v355_v20, %v275_v19  ;;  %v433_v23 = vadd.f32 %v432_v21, %v275_v19  ;;  %v357_v24 = vpop.f32.mrb[9].mxu0  ;;  %v434_v25 = vpop.f32.mrb[9].mxu1 }
 0x1c8   :  { %v358_v27 = vadd.f32 %v357_v24, %v275_v19  ;;  %v435_v28 = vadd.f32 %v434_v25, %v275_v19  ;;  %v521_v19 = vunpack.c.0.s8 %v520_v8 }
 0x1c9   :  { %v443_v31 = vmax.f32 %v356_v22, 0.0  ;;  %v445_v6 = vmax.f32 %v433_v23, 0.0  ;;  %v508_v22 = vrot.slane %v503_v14, %v507_v11 }
 0x1ca   :  { %v361_v29 = vpop.f32.mrb[10].mxu0  ;;  %v438_v30 = vpop.f32.mrb[10].mxu1  ;;  %v444_v36 = vmax.f32 %v358_v27, 0.0  ;;  %v446_v37 = vmax.f32 %v435_v28, 0.0 }
 0x1cb   :  { %v362_v32 = vadd.f32 %v361_v29, %v280_v26  ;;  %v439_v33 = vadd.f32 %v438_v30, %v280_v26  ;;  %v363_v34 = vpop.f32.mrb[11].mxu0  ;;  %v440_v35 = vpop.f32.mrb[11].mxu1  ;;  %v463_v46 = vmul.f32 %v456_v42, %v443_v31  ;;  %v465_v47 = vmul.f32 %v456_v42, %v445_v6 }
 0x1cc   :  { %v364_v38 = vadd.f32 %v363_v34, %v280_v26  ;;  %v441_v39 = vadd.f32 %v440_v35, %v280_v26  ;;  %v464_v50 = vmul.f32 %v456_v42, %v444_v36  ;;  %v466_v51 = vmul.f32 %v456_v42, %v446_v37 }
 0x1cd   :  { %v447_v40 = vmax.f32 %v362_v32, 0.0  ;;  %v449_v41 = vmax.f32 %v439_v33, 0.0  ;;  %v524_v29 = vsub.s32 %v521_v19, %v506_v63 }
 0x1ce   :  { %v448_v44 = vmax.f32 %v364_v38, 0.0  ;;  %v450_v45 = vmax.f32 %v441_v39, 0.0 }
 0x1cf   :  { %v467_v48 = vmul.f32 %v461_v43, %v447_v40  ;;  %v469_v49 = vmul.f32 %v461_v43, %v449_v41 }
 0x1d0   :  { %v468_v52 = vmul.f32 %v461_v43, %v448_v44  ;;  %v470_v53 = vmul.f32 %v461_v43, %v450_v45 }
 0x1d1   :  { %v471_v55 = vadd.f32 %v467_v48, %v463_v46  ;;  %v485_v56 = vadd.f32 %v469_v49, %v465_v47 }
 0x1d2   :  { %v478_v57 = vadd.f32 %v468_v52, %v464_v50  ;;  %v492_v58 = vadd.f32 %v470_v53, %v466_v51 }
 0x1d3   :  { %v472_v59 = vrot.slane %v471_v55, 4  ;;  %v486_v60 = vrot.slane %v485_v56, 4 }
 0x1d4   :  { %v479_v61 = vrot.slane %v478_v57, 4  ;;  %v493_v62 = vrot.slane %v492_v58, 4 }
 0x1d5   :  { %v473_v0 = vadd.f32 %v472_v59, %v471_v55  ;;  %v487_v1 = vadd.f32 %v486_v60, %v485_v56 }
 0x1d6   :  { %v480_v2 = vadd.f32 %v479_v61, %v478_v57  ;;  %v494_v3 = vadd.f32 %v493_v62, %v492_v58 }
 0x1d7   :  { %v474_v4 = vrot.slane %v473_v0, 2  ;;  %v488_v5 = vrot.slane %v487_v1, 2 }
 0x1d8   :  { %v481_v9 = vrot.slane %v480_v2, 2  ;;  %v495_v10 = vrot.slane %v494_v3, 2 }
 0x1d9   :  { %v475_v12 = vadd.f32 %v474_v4, %v473_v0  ;;  %v489_v13 = vadd.f32 %v488_v5, %v487_v1 }
 0x1da   :  { %v482_v15 = vadd.f32 %v481_v9, %v480_v2  ;;  %v496_v16 = vadd.f32 %v495_v10, %v494_v3 }
 0x1db   :  { %v476_v17 = vrot.slane %v475_v12, 1  ;;  %v490_v18 = vrot.slane %v489_v13, 1 }
 0x1dc   :  { %v483_v20 = vrot.slane %v482_v15, 1  ;;  %v497_v21 = vrot.slane %v496_v16, 1 }
 0x1dd   :  { %v477_v23 = vadd.f32 %v476_v17, %v475_v12  ;;  %v491_v24 = vadd.f32 %v490_v18, %v489_v13 }
 0x1de   :  { %v484_v25 = vadd.f32 %v483_v20, %v482_v15  ;;  %v498_v26 = vadd.f32 %v497_v21, %v496_v16 }
 0x1df   :  { %v509_v27 = vadd.f32 %v508_v22, %v477_v23  ;;  %v511_v28 = vadd.f32 %v508_v22, %v491_v24 }
 0x1e0   :  { %v510_v30 = vadd.f32 %v508_v22, %v484_v25  ;;  %v512_v31 = vadd.f32 %v508_v22, %v498_v26 }
 0x1e2   :  { %v517_v6 = vcombine.low %v509_v27, %v510_v30  ;;  %v518_v32 = vcombine.low %v511_v28, %v512_v31 }
 0x1e4   :  { %v525_v33 = vrot.slane %v517_v6, %v524_v29  ;;  %v532_v34 = vrot.slane %v518_v32, %v524_v29 }
 0x1e6   :  { %v533_v35 = vcombine.low %v525_v33, %v532_v34 }
 0x1e8   :  { %v540_v36 = vrot.slane %v533_v35, %v524_v29 }
 0x1ea   :  { %546 = vst.msk [vmem:[#allocation3] sm:$0xf] %vm544_vm2, %v540_v36 }
 0x1eb   :  { %606 = shalt.err (!%p603_p4)
}
 0x1ec   :  { %s607_s13 = scalar_lea.hbm %s759_s7, 64 }
 0x1ed   :  { %p608_p5 = scmp.ne.s32.totalorder %s759_s7, %s607_s13  ;;  %p611_p6 = scmp.lt.u32.totalorder %s607_s13, %s759_s7 }
 0x1ef   :  { %p613_p7 = pnand %p611_p6, %p608_p5 }
 0x1f1   :  { %616 = shalt.err (!%p613_p7)
}
 0x1f2   :  { %556 = dma.vmem_to_hbm [thread:$0]  %s554_s10, 64, %s759_s7, [#allocation4]  }
 0x1f3   :  { %617 = dma.done.wait [#allocation4], 64  }
 0x1f4   :  { %618 = vsyncadd [#allocation4], 4294967232 }
 0x1f5   :  { %560 = vsyncpa [#allocation4], 1 }

</bundles_post_ra>
